<compile_context>
chip_gen: v6e
topology: v6e:2x2x1
jax: 0.10.0
libtpu: 0.0.40
codegen_flags: <defaults>
</compile_context>

<pallas_src>
import jax
import jax.numpy as jnp
from jax.experimental import pallas as pl
from jax.experimental.pallas import tpu as pltpu

_LANE = 128
_SUBLANE_PACK = 32                  # row rounding for split tiles (f32/bf16/int8 safe)
_MIN_KERNEL_ELEMS = 8 * _LANE       # below this a pallas_call is pure overhead


def _scale_kernel(s_ref, x_ref, o_ref):
    # Pure VPU elementwise multiply of the VMEM tile by an SMEM scalar.
    o_ref[...] = x_ref[...] * s_ref[0].astype(x_ref.dtype)


def _tpu_generation() -> str:
    try:
        kind = jax.devices()[0].device_kind.lower()
    except Exception:
        return "other"
    if "v7" in kind or "7x" in kind:
        return "v7x"
    if "v6" in kind:
        return "v6e"
    if "v5" in kind:
        return "v5e"
    return "other"


def _round_up(x: int, m: int) -> int:
    return ((x + m - 1) // m) * m


def _max_tile_bytes(gen: str) -> int:
    if gen == "v7x":
        return 8 << 20      # 8 MiB/buffer -> ~32 MiB double-buffered footprint
    if gen == "v6e":
        return 4 << 20      # 4 MiB/buffer -> 16 MiB footprint (under 32 MiB default)
    return 2 << 20          # v5e / unknown: 2 MiB/buffer, 8 MiB footprint


def _pick_tile_rows(rows: int, lane: int, itemsize: int, gen: str) -> int:
    max_rows = max(_SUBLANE_PACK,
                   (_max_tile_bytes(gen) // (lane * itemsize)) & ~(_SUBLANE_PACK - 1))

    if rows <= max_rows:
        # v5e/v6e (1 TensorCore): one max-size tile; extra steps are pure overhead.
        # v7x: split big-enough tensors into 2 even 'parallel' shards so both
        # TensorCores stream HBM.
        if (gen == "v7x"
                and rows * lane * itemsize >= (2 << 20)
                and rows >= 2 * _SUBLANE_PACK):
            return _round_up(pl.cdiv(rows, 2), _SUBLANE_PACK)
        return rows

    n_steps = pl.cdiv(rows, max_rows)
    if gen == "v7x" and n_steps % 2 == 1:
        n_steps += 1        # even step count -> balanced megacore shards
    return _round_up(pl.cdiv(rows, n_steps), _SUBLANE_PACK)


def _pick_lane(n: int):
    # Wider lane dim when the size allows: fewer rows per DMA descriptor.
    for lane in (512, 256, 128):
        if n % lane == 0:
            return lane
    return None


def _scale_bulk_2d(x2d, scale_arr, donate: bool = False):
    rows, lane = x2d.shape
    itemsize = x2d.dtype.itemsize
    gen = _tpu_generation()

    tile_rows = _pick_tile_rows(rows, lane, itemsize, gen)
    grid = (pl.cdiv(rows, tile_rows),)   # partial last block is masked by Pallas

    tile_bytes = tile_rows * lane * itemsize
    # Double-buffered in + out = 4 tiles; +8 MiB headroom for internal scratch.
    # Worst case (v7x, 8 MiB tiles) = 40 MiB < 64 MiB physical VMEM.
    vmem_limit = int(max(32 << 20, 4 * tile_bytes + (8 << 20)))

    cost = pl.CostEstimate(
        flops=rows * lane,
        transcendentals=0,
        bytes_accessed=2 * rows * lane * itemsize,
    )

    return pl.pallas_call(
        _scale_kernel,
        out_shape=jax.ShapeDtypeStruct((rows, lane), x2d.dtype),
        grid_spec=pltpu.PrefetchScalarGridSpec(
            num_scalar_prefetch=0,
            grid=grid,
            in_specs=[
                pl.BlockSpec(memory_space=pltpu.MemorySpace.SMEM),      # scale
                pl.BlockSpec((tile_rows, lane), lambda i: (i, 0)),      # x tile
            ],
            out_specs=pl.BlockSpec((tile_rows, lane), lambda i: (i, 0)),
        ),
        compiler_params=pltpu.CompilerParams(
            dimension_semantics=("parallel",),
            vmem_limit_bytes=vmem_limit,
        ),
        cost_estimate=cost,
        # Only useful if the caller donates x at the JIT boundary; otherwise
        # XLA inserts a defensive copy, so it's opt-in.
        input_output_aliases=({1: 0} if donate else {}),
    )(scale_arr, x2d)


def scale_forward(x, scale, *, donate: bool = False):
    """Pallas equivalent of Scale(scale).forward(x) = x * scale."""
    x = jnp.asarray(x)
    orig_shape = x.shape

    if not jnp.issubdtype(x.dtype, jnp.floating):
        # Integer/bool inputs: follow jnp (== torch) promotion, e.g. int*float -> float.
        return x * scale

    n_total = x.size
    lane = _pick_lane(n_total)
    if lane is None or n_total < _MIN_KERNEL_ELEMS:
        # Unaligned or tiny: a single fused multiply over the WHOLE tensor is
        # strictly cheaper than kernel-bulk + concat (no extra HBM pass).
        return x * jnp.asarray(scale, dtype=x.dtype)

    scale_arr = jnp.asarray(scale, dtype=jnp.float32).reshape((1,))
    x2d = x.reshape(n_total // lane, lane)   # free bitcast for contiguous x
    out2d = _scale_bulk_2d(x2d, scale_arr, donate=donate)
    return out2d.reshape(orig_shape)


if __name__ == "__main__":
    scale = 1.0 / 255.0

    # NCHW pixel observations, as fed through Scale(1/255.) in PPO-pixel.
    x = jax.random.normal(jax.random.PRNGKey(0), (2, 4, 16, 16), jnp.float32) * 255.0
    out = jax.block_until_ready(scale_forward(x, scale))
    assert out.shape == x.shape and out.dtype == x.dtype
    assert jnp.allclose(out, x * scale, rtol=1e-6, atol=1e-6)

    # 128-aligned but row count not a multiple of 8 (17*128 elems): still takes
    # the kernel path with a single full-array block (relaxed alignment).
    x2 = jax.random.normal(jax.random.PRNGKey(1), (2, 4, 16, 17), jnp.float32) * 255.0
    out2 = jax.block_until_ready(scale_forward(x2, scale))
    assert out2.shape == x2.shape and out2.dtype == x2.dtype
    assert jnp.allclose(out2, x2 * scale, rtol=1e-6, atol=1e-6)

    # Truly unaligned (105 elems): whole-tensor fused-multiply fallback (no concat).
    x3 = jax.random.normal(jax.random.PRNGKey(2), (3, 5, 7), jnp.float32)
    out3 = jax.block_until_ready(scale_forward(x3, scale))
    assert out3.shape == x3.shape and jnp.allclose(out3, x3 * scale, rtol=1e-6, atol=1e-6)

    # bf16 path: scale applied in x's dtype (matches torch scalar * bf16 tensor).
    x4 = jax.random.normal(jax.random.PRNGKey(3), (8, 16, 64), jnp.bfloat16)
    out4 = jax.block_until_ready(scale_forward(x4, scale))
    assert out4.shape == x4.shape and out4.dtype == jnp.bfloat16
    ref4 = x4 * jnp.asarray(scale, dtype=jnp.bfloat16)
    assert jnp.allclose(out4.astype(jnp.float32), ref4.astype(jnp.float32),
                        rtol=1e-2, atol=1e-6)

    print("KERNEL_OK")
</pallas_src>

<mosaic_0001>
module attributes {stable_mosaic.version = 11 : i64} {
  func.func @_scale_kernel(%arg0: i32, %arg1: memref<1xf32, #tpu.memory_space<smem>>, %arg2: memref<4x512xf32, #tpu.memory_space<vmem>>, %arg3: memref<4x512xf32, #tpu.memory_space<vmem>>) attributes {dimension_semantics = [#tpu.dimension_semantics<parallel>], iteration_bounds = array<i64: 1>, scalar_prefetch = 0 : i64, scratch_operands = 0 : i64, tpu.core_type = #tpu.core_type<tc>, window_params = [{transform_indices = @transform_0, window_bounds = array<i64: 1>}, {transform_indices = @transform_1, window_bounds = array<i64: 4, 512>}, {transform_indices = @transform_2, window_bounds = array<i64: 4, 512>}]} {
    %c0 = arith.constant 0 : index
    %c0_0 = arith.constant 0 : index
    %0 = vector.load %arg2[%c0, %c0_0] : memref<4x512xf32, #tpu.memory_space<vmem>>, vector<4x512xf32>
    %c0_1 = arith.constant 0 : index
    %1 = memref.load %arg1[%c0_1] : memref<1xf32, #tpu.memory_space<smem>>
    %2 = vector.broadcast %1 : f32 to vector<4x512xf32>
    %3 = arith.mulf %0, %2 : vector<4x512xf32>
    %c0_2 = arith.constant 0 : index
    %c0_3 = arith.constant 0 : index
    %4 = vector.load %arg3[%c0_2, %c0_3] : memref<4x512xf32, #tpu.memory_space<vmem>>, vector<4x512xf32>
    tpu.vector_store %arg3[%c0_2, %c0_3], %3 {strides = array<i32>} : memref<4x512xf32, #tpu.memory_space<vmem>>, vector<4x512xf32>,
    return
  }
  func.func @transform_0(%arg0: i32) -> i32 {
    %c0_i32 = arith.constant 0 : i32
    %c0_i32_0 = arith.constant 0 : i32
    return %c0_i32 : i32
  }
  func.func @transform_1(%arg0: i32) -> (i32, i32) {
    %c0_i32 = arith.constant 0 : i32
    %c0_i32_0 = arith.constant 0 : i32
    return %arg0, %c0_i32 : i32, i32
  }
  func.func @transform_2(%arg0: i32) -> (i32, i32) {
    %c0_i32 = arith.constant 0 : i32
    %c0_i32_0 = arith.constant 0 : i32
    return %arg0, %c0_i32 : i32, i32
  }
}

</mosaic_0001>

<bundles_post_ra>
// kernel: tpu_custom_call.1
= control target key start
LH: loop header
LB: loop body
LE: loop exit
PB: predicated region body
PF: predicated region fallthrough
CT: control target
= control target key end

     0   :  { %8 = vsyncpa [#allocation4], 0  ;;  %s120_s0 = inlined_call_operand.<no memory space> [shape: f32[1], index: 0, kind: input, shape index: {}]   ;;  %s121_s1 = inlined_call_operand.hbm [shape: f32[4,512], index: 1, kind: input, shape index: {}]   ;;  %s122_s2 = inlined_call_operand.hbm [shape: f32[4,512], index: 2, kind: output, shape index: {}]  }
   0x1   :  { %9 = vsyncpa [#allocation5], 0  ;;  %s94_s9 = smov [#allocation3]  }
   0x2   :  { %s18_s10 = sshll.u32 %s94_s9, 4  ;;  %s19_s10 = int_to_ptr.vmem [resolvable:$true] %s18_s10 }
   0x3   :  { %s58_s11 = scalar_lea.vmem %s19_s10, 256  ;;  %p63_p1 = scmp.lt.s32.totalorder %s19_s10, %s19_s10 }
   0x4   :  { %p59_p0 = scmp.ne.s32.totalorder %s19_s10, %s58_s11  ;;  %p64_p2 = scmp.lt.s32.totalorder %s58_s11, %s58_s11 }
   0x6   :  { %p65_p3 = por %p64_p2, %p63_p1 }
   0x8   :  { %p66_p4 = pnand %p65_p3, %p59_p0 }
   0xa   :  { %69 = shalt.err (!%p66_p4)
}
   0xb   :  { %21 = dma.hbm_to_vmem [thread:$0]  %s121_s1, 256, %s19_s10, [#allocation4]  }
   0xc   :  { %90 = dma.done.wait [#allocation4], 256  }
   0xd   :  { %91 = vsyncadd [#allocation4], 4294967040  ;;  %v28_v0 = vstv %s120_s0  ;;  %s95_s16 = smov [#allocation6]   ;;  %v25_v1 = vld [vmem:[#allocation3] sm:$0xff]  ;;  %v26_v2 = vld [vmem:[#allocation3 + $0x8] sm:$0xff] }
   0xe   :  { %s39_s17 = sshll.u32 %s95_s16, 4  ;;  %v29_v3 = vmul.f32 %v28_v0, %v25_v1  ;;  %v30_v4 = vmul.f32 %v28_v0, %v26_v2  ;;  %s40_s17 = int_to_ptr.vmem [resolvable:$true] %s39_s17 }
   0xf   :  { %s70_s18 = scalar_lea.vmem %s40_s17, 256  ;;  %p75_p6 = scmp.lt.s32.totalorder %s40_s17, %s40_s17 }
  0x10   :  { %31 = vst [vmem:[#allocation6] sm:$0xff] %v29_v3  ;;  %32 = vst [vmem:[#allocation6 + $0x8] sm:$0xff] %v30_v4  ;;  %p71_p5 = scmp.ne.s32.totalorder %s40_s17, %s70_s18  ;;  %p76_p7 = scmp.lt.s32.totalorder %s70_s18, %s70_s18 }
  0x12   :  { %p77_p8 = por %p76_p7, %p75_p6 }
  0x14   :  { %p78_p9 = pnand %p77_p8, %p71_p5 }
  0x16   :  { %81 = shalt.err (!%p78_p9)
}
  0x17   :  { %42 = dma.vmem_to_hbm [thread:$0]  %s40_s17, 256, %s122_s2, [#allocation5]  }
  0x18   :  { %92 = dma.done.wait [#allocation5], 256  }
  0x19   :  { %93 = vsyncadd [#allocation5], 4294967040 }
  0x1a   :  { %46 = vsyncpa [#allocation4], 1 }
  0x1b   :  { %47 = vsyncpa [#allocation5], 1 }

</bundles_post_ra>
